<compile_context>
chip_gen: v6e
topology: v6e:2x2x1
jax: 0.10.0
libtpu: 0.0.40
codegen_flags: <defaults>
</compile_context>

<pallas_src>
import functools

import jax
import jax.numpy as jnp
import numpy as np
from jax.experimental import pallas as pl
from jax.experimental.pallas import tpu as pltpu


def _residual_se_kernel(x_ref, w1_ref, w2_ref, wsc_ref, fc1w_ref, fc2w_ref,
                        pvec_ref, mask_ref, pind_ref, bind_ref, o_ref, *,
                        n_batch, c_in, c_out, c_red, length, k, pool, nl_pad,
                        eps, use_projection):
    """Fused ResidualSEBlock forward (batch folded into a 128-dense lane axis).

    x_ref    : (C_in, NL_PAD) f32   input, zero-padded lanes beyond N*L
    w1_ref   : (K*C_out, C_in) bf16 conv1 weights, rows grouped per tap
    w2_ref   : (K*C_out, C_out) bf16 conv2 weights, rows grouped per tap
    wsc_ref  : (C_out, C_in) bf16   1x1 shortcut conv weight (unused if identity)
    fc1w_ref : (C_red, C_out) f32   SE fc1 weight
    fc2w_ref : (C_out, C_red) f32   SE fc2 weight
    pvec_ref : (C_out, 8) f32       packed per-channel params:
               0 bn1_g | 1 bn1_b | 2 bn2_g | 3 bn2_b | 4 bnsc_g | 5 bnsc_b |
               6 fc2_b | 7 fc1_b (first C_red rows)
    mask_ref : (K+1, NL_PAD) f32    row 0 = valid-lane mask, rows 1..K = per-tap
                                    in-segment keep masks (0/1)
    pind_ref : (NL_PAD, N) bf16     segment-mean indicator (1/L inside segment)
    bind_ref : (N, NL_PAD) bf16     segment-broadcast indicator (0/1)
    o_ref    : (C_out, NL_PAD) f32  sliding-window max; compaction done in wrapper
    """
    f32 = jnp.float32
    bf16 = jnp.bfloat16
    nl = n_batch * length
    pad = k // 2
    inv_nl = 1.0 / nl

    # ---- hoisted per-channel parameters (single broadcasted read each) ----
    bn1_g, bn1_b = pvec_ref[:, 0:1], pvec_ref[:, 1:2]
    bn2_g, bn2_b = pvec_ref[:, 2:3], pvec_ref[:, 3:4]
    bnsc_g, bnsc_b = pvec_ref[:, 4:5], pvec_ref[:, 5:6]
    fc2_b = pvec_ref[:, 6:7]
    fc1_b = pvec_ref[0:c_red, 7:8]
    valid = mask_ref[0:1, :]                                   # (1, NL_PAD) 0/1

    def conv(h, w_ref):
        # k-tap temporal conv as k accumulated MXU matmuls (no im2col buffer).
        # Tap shifts = XLU roll + per-tap boundary mask (zero across segment
        # boundaries and across the zero pad region).
        z = None
        for t in range(k):
            off = t - pad
            if off == 0:
                tap = h
            elif off < 0:
                tap = pltpu.roll(h, -off, axis=1) * mask_ref[1 + t:2 + t, :]
            else:
                tap = pltpu.roll(h, nl_pad - off, axis=1) * mask_ref[1 + t:2 + t, :]
            d = jnp.dot(w_ref[t * c_out:(t + 1) * c_out, :], tap.astype(bf16),
                        preferred_element_type=f32)
            z = d if z is None else z + d
        return z                                               # (C_out, NL_PAD)

    def bn(z, g, b, relu):
        # Training-mode BatchNorm1d over (N, L); conv bias omitted (cancelled by
        # the mean); gamma*rsqrt(var+eps) folded into one per-channel scale.
        # z has zeros in pad lanes, so plain lane sums give the batch stats.
        s = jnp.sum(z, axis=-1, keepdims=True)
        sq = jnp.sum(z * z, axis=-1, keepdims=True)
        mean = s * inv_nl
        var = jnp.maximum(sq * inv_nl - mean * mean, 0.0)
        sc = g * jax.lax.rsqrt(var + eps)
        y = z * sc + (b - mean * sc)
        return jnp.maximum(y, 0.0) if relu else y

    x = x_ref[...]                                             # pads are zero

    # ---- conv1 + BN1 + ReLU ----
    h1 = bn(conv(x, w1_ref), bn1_g, bn1_b, relu=True)
    h1 = h1 * valid            # re-zero pad lanes so conv2 / BN2 stats stay exact

    # ---- conv2 + BN2 + ReLU ----
    h2 = bn(conv(h1, w2_ref), bn2_g, bn2_b, relu=True)
    # (h2 pad lanes never feed BN stats, SE pooling, or selected outputs.)

    # ---- shortcut: 1x1 conv + BN (projection) or identity ----
    if use_projection:
        zsc = jnp.dot(wsc_ref[...], x.astype(bf16), preferred_element_type=f32)
        res = bn(zsc, bnsc_g, bnsc_b, relu=False)
    else:
        res = x

    # ---- Squeeze & Excitation: segment mean + gate broadcast as tiny matmuls ----
    pooled = jnp.dot(h2.astype(bf16), pind_ref[...],
                     preferred_element_type=f32)               # (C_out, N)
    u = jnp.maximum(jnp.dot(fc1w_ref[...], pooled,
                            preferred_element_type=f32) + fc1_b, 0.0)  # (C_red, N)
    v = jnp.dot(fc2w_ref[...], u, preferred_element_type=f32) + fc2_b  # (C_out, N)
    gate = 1.0 / (1.0 + jnp.exp(-v))                           # sigmoid
    se_scale = jnp.dot(gate.astype(bf16), bind_ref[...],
                       preferred_element_type=f32)             # (C_out, NL_PAD)

    a = jnp.maximum(h2 * se_scale + res, 0.0)                  # relu(se(x) + res)

    # ---- MaxPool1d(pool): sliding-window max via XLU rolls; the every-pool-th
    #      lane compaction is pure layout plumbing done by the wrapper. ----
    amax = a
    for p in range(1, pool):
        amax = jnp.maximum(amax, pltpu.roll(a, nl_pad - p, axis=1))

    # TODO(synk): nn.Dropout(0.3) is stochastic in training mode; applied as identity.
    o_ref[...] = amax.astype(o_ref.dtype)


def residual_se_block_forward(x, conv1_w, conv1_b, bn1_g, bn1_b,
                              conv2_w, conv2_b, bn2_g, bn2_b,
                              sc_w, sc_b, bnsc_g, bnsc_b,
                              fc1_w, fc1_b, fc2_w, fc2_b,
                              *, pool_size=2, eps=1e-5):
    """x: (N, C_in, L) float32. Returns (N, C_out, L // pool_size)."""
    n, c_in, length = x.shape
    c_out, _, k = conv1_w.shape
    c_red = fc1_w.shape[0]
    assert length % pool_size == 0, "MaxPool window must not cross batch segments"
    assert c_red <= c_out, "fc1 bias packing requires c_red <= c_out"
    pad = k // 2
    nl = n * length
    nl_pad = ((nl + 127) // 128) * 128                         # 128-dense lane axis
    use_projection = sc_w is not None

    f32, bf16 = jnp.float32, jnp.bfloat16

    # (C_in, N*L) slab, batch folded into lanes (batch-major), zero pad to nl_pad.
    x2d = x.astype(f32).transpose(1, 0, 2).reshape(c_in, nl)
    x2d = jnp.pad(x2d, ((0, 0), (0, nl_pad - nl)))

    # Per-tap weight stacks: rows [t*C_out:(t+1)*C_out] == w[:, :, t]; bf16 MXU operands.
    w1s = conv1_w.astype(bf16).transpose(2, 0, 1).reshape(k * c_out, c_in)
    w2s = conv2_w.astype(bf16).transpose(2, 0, 1).reshape(k * c_out, c_out)
    wsc = (sc_w.astype(bf16).reshape(c_out, c_in) if use_projection
           else jnp.zeros((c_out, c_in), bf16))

    # Packed per-channel params (conv biases dropped: training-mode BN cancels them).
    fc1b_pad = jnp.zeros((c_out,), f32).at[:c_red].set(fc1_b.astype(f32))
    if use_projection:
        gsc, bsc = bnsc_g.astype(f32), bnsc_b.astype(f32)
    else:
        gsc, bsc = jnp.ones((c_out,), f32), jnp.zeros((c_out,), f32)
    pvec = jnp.stack([bn1_g.astype(f32), bn1_b.astype(f32),
                      bn2_g.astype(f32), bn2_b.astype(f32),
                      gsc, bsc, fc2_b.astype(f32), fc1b_pad], axis=1)   # (C_out, 8)

    # Precomputed lane masks: row 0 = valid lanes, rows 1..k = per-tap keep masks.
    lanes = np.arange(nl_pad)
    pos = lanes % length
    rows = [(lanes < nl)]
    for t in range(k):
        off = t - pad
        if off == 0:
            keep = np.ones(nl_pad, bool)
        elif off < 0:
            keep = pos >= -off
        else:
            keep = (pos < length - off) & (lanes < nl_pad - off)
        rows.append(keep)
    masks = jnp.asarray(np.stack(rows).astype(np.float32))             # (k+1, nl_pad)

    # Segment indicators for SE (mean pooling and gate broadcast).
    seg = ((lanes[:, None] // length) == np.arange(n)[None, :]) & (lanes[:, None] < nl)
    pool_ind = jnp.asarray((seg.astype(np.float32) / length)).astype(bf16)  # (nl_pad, N)
    bcast_ind = jnp.asarray(seg.T.astype(np.float32)).astype(bf16)          # (N, nl_pad)

    kernel = functools.partial(
        _residual_se_kernel, n_batch=n, c_in=c_in, c_out=c_out, c_red=c_red,
        length=length, k=k, pool=pool_size, nl_pad=nl_pad, eps=eps,
        use_projection=use_projection)

    out_full = pl.pallas_call(
        kernel,
        out_shape=jax.ShapeDtypeStruct((c_out, nl_pad), f32),
        grid_spec=pltpu.PrefetchScalarGridSpec(
            num_scalar_prefetch=0,
            grid=(1,),                                          # single fused step
            in_specs=[
                pl.BlockSpec((c_in, nl_pad), lambda i: (0, 0)),
                pl.BlockSpec((k * c_out, c_in), lambda i: (0, 0)),
                pl.BlockSpec((k * c_out, c_out), lambda i: (0, 0)),
                pl.BlockSpec((c_out, c_in), lambda i: (0, 0)),
                pl.BlockSpec((c_red, c_out), lambda i: (0, 0)),
                pl.BlockSpec((c_out, c_red), lambda i: (0, 0)),
                pl.BlockSpec((c_out, 8), lambda i: (0, 0)),
                pl.BlockSpec((k + 1, nl_pad), lambda i: (0, 0)),
                pl.BlockSpec((nl_pad, n), lambda i: (0, 0)),
                pl.BlockSpec((n, nl_pad), lambda i: (0, 0)),
            ],
            out_specs=pl.BlockSpec((c_out, nl_pad), lambda i: (0, 0)),
        ),
        compiler_params=pltpu.CompilerParams(dimension_semantics=("arbitrary",)),
    )(x2d, w1s, w2s, wsc, fc1_w.astype(f32), fc2_w.astype(f32), pvec,
      masks, pool_ind, bcast_ind)

    # Layout plumbing back to PyTorch's (N, C_out, L_out): pick valid lanes and
    # every pool_size-th column of the sliding-window max.
    out = out_full[:, :nl].reshape(c_out, n, length)[:, :, ::pool_size]
    return out.transpose(1, 0, 2)


def reference_forward(x, conv1_w, conv1_b, bn1_g, bn1_b, conv2_w, conv2_b, bn2_g, bn2_b,
                      sc_w, sc_b, bnsc_g, bnsc_b, fc1_w, fc1_b, fc2_w, fc2_b,
                      *, pool_size=2, eps=1e-5):
    """Pure-JAX reference matching the PyTorch training-mode forward (dropout=eval)."""
    def conv1d(h, w, b):
        kk = w.shape[-1]
        z = jax.lax.conv_general_dilated(h, w, (1,), [(kk // 2, kk // 2)],
                                         dimension_numbers=("NCH", "OIH", "NCH"))
        return z + b[None, :, None]

    def bn(z, g, be):
        mean = z.mean(axis=(0, 2), keepdims=True)
        var = ((z - mean) ** 2).mean(axis=(0, 2), keepdims=True)   # biased (training BN)
        return (z - mean) / jnp.sqrt(var + eps) * g[None, :, None] + be[None, :, None]

    x = x.astype(jnp.float32)
    res = bn(conv1d(x, sc_w, sc_b), bnsc_g, bnsc_b) if sc_w is not None else x
    h = jax.nn.relu(bn(conv1d(x, conv1_w, conv1_b), bn1_g, bn1_b))
    h = jax.nn.relu(bn(conv1d(h, conv2_w, conv2_b), bn2_g, bn2_b))
    pooled = h.mean(axis=2)                                        # (N, C_out)
    u = jax.nn.relu(pooled @ fc1_w.T + fc1_b)
    gate = jax.nn.sigmoid(u @ fc2_w.T + fc2_b)
    h = h * gate[:, :, None]
    h = jax.nn.relu(h + res)
    nb, c, L = h.shape
    h = h.reshape(nb, c, L // pool_size, pool_size).max(axis=-1)   # MaxPool1d
    return h                                                       # dropout: identity


if __name__ == "__main__":
    # Small shapes consistent with the module: batch=2, in_ch=4, out_ch=16, L=16, k=3.
    N, C_IN, C_OUT, L = 2, 4, 16, 16
    K, POOL, REDUCTION = 3, 2, 8
    C_RED = C_OUT // REDUCTION

    key = jax.random.PRNGKey(0)
    ks = jax.random.split(key, 17)

    def unif(k_, shape, bound):
        return jax.random.uniform(k_, shape, jnp.float32, -bound, bound)

    x = jax.random.normal(ks[0], (N, C_IN, L), jnp.float32)

    b1 = 1.0 / np.sqrt(C_IN * K)
    conv1_w, conv1_b = unif(ks[1], (C_OUT, C_IN, K), b1), unif(ks[2], (C_OUT,), b1)
    b2 = 1.0 / np.sqrt(C_OUT * K)
    conv2_w, conv2_b = unif(ks[3], (C_OUT, C_OUT, K), b2), unif(ks[4], (C_OUT,), b2)
    bs = 1.0 / np.sqrt(C_IN)
    sc_w, sc_b = unif(ks[5], (C_OUT, C_IN, 1), bs), unif(ks[6], (C_OUT,), bs)
    bn1_g = jax.random.uniform(ks[7], (C_OUT,), jnp.float32, 0.5, 1.5)
    bn1_b = 0.1 * jax.random.normal(ks[8], (C_OUT,), jnp.float32)
    bn2_g = jax.random.uniform(ks[9], (C_OUT,), jnp.float32, 0.5, 1.5)
    bn2_b = 0.1 * jax.random.normal(ks[10], (C_OUT,), jnp.float32)
    bnsc_g = jax.random.uniform(ks[11], (C_OUT,), jnp.float32, 0.5, 1.5)
    bnsc_b = 0.1 * jax.random.normal(ks[12], (C_OUT,), jnp.float32)
    bf1 = 1.0 / np.sqrt(C_OUT)
    fc1_w, fc1_b = unif(ks[13], (C_RED, C_OUT), bf1), unif(ks[14], (C_RED,), bf1)
    bf2 = 1.0 / np.sqrt(C_RED)
    fc2_w, fc2_b = unif(ks[15], (C_OUT, C_RED), bf2), unif(ks[16], (C_OUT,), bf2)

    args = (x, conv1_w, conv1_b, bn1_g, bn1_b, conv2_w, conv2_b, bn2_g, bn2_b,
            sc_w, sc_b, bnsc_g, bnsc_b, fc1_w, fc1_b, fc2_w, fc2_b)

    out = residual_se_block_forward(*args, pool_size=POOL)
    out = jax.block_until_ready(out)

    ref = reference_forward(*args, pool_size=POOL)
    # bf16 MXU operands in the kernel vs default-precision XLA reference -> bf16-level tol.
    np.testing.assert_allclose(np.asarray(out), np.asarray(ref), rtol=2e-2, atol=2e-2)

    assert out.shape == (N, C_OUT, L // POOL)
    print("KERNEL_OK")
</pallas_src>

<mosaic_0001>
module attributes {stable_mosaic.version = 11 : i64} {
  func.func @_residual_se_kernel(%arg0: i32, %arg1: memref<4x128xf32, #tpu.memory_space<vmem>>, %arg2: memref<48x4xbf16, #tpu.memory_space<vmem>>, %arg3: memref<48x16xbf16, #tpu.memory_space<vmem>>, %arg4: memref<16x4xbf16, #tpu.memory_space<vmem>>, %arg5: memref<2x16xf32, #tpu.memory_space<vmem>>, %arg6: memref<16x2xf32, #tpu.memory_space<vmem>>, %arg7: memref<16x8xf32, #tpu.memory_space<vmem>>, %arg8: memref<4x128xf32, #tpu.memory_space<vmem>>, %arg9: memref<128x2xbf16, #tpu.memory_space<vmem>>, %arg10: memref<2x128xbf16, #tpu.memory_space<vmem>>, %arg11: memref<16x128xf32, #tpu.memory_space<vmem>>) attributes {dimension_semantics = [#tpu.dimension_semantics<arbitrary>], iteration_bounds = array<i64: 1>, scalar_prefetch = 0 : i64, scratch_operands = 0 : i64, tpu.core_type = #tpu.core_type<tc>, window_params = [{pipeline_mode = #tpu.pipeline_mode<synchronous>, transform_indices = @transform_0, window_bounds = array<i64: 4, 128>}, {pipeline_mode = #tpu.pipeline_mode<synchronous>, transform_indices = @transform_1, window_bounds = array<i64: 48, 4>}, {pipeline_mode = #tpu.pipeline_mode<synchronous>, transform_indices = @transform_2, window_bounds = array<i64: 48, 16>}, {pipeline_mode = #tpu.pipeline_mode<synchronous>, transform_indices = @transform_3, window_bounds = array<i64: 16, 4>}, {pipeline_mode = #tpu.pipeline_mode<synchronous>, transform_indices = @transform_4, window_bounds = array<i64: 2, 16>}, {pipeline_mode = #tpu.pipeline_mode<synchronous>, transform_indices = @transform_5, window_bounds = array<i64: 16, 2>}, {pipeline_mode = #tpu.pipeline_mode<synchronous>, transform_indices = @transform_6, window_bounds = array<i64: 16, 8>}, {pipeline_mode = #tpu.pipeline_mode<synchronous>, transform_indices = @transform_7, window_bounds = array<i64: 4, 128>}, {pipeline_mode = #tpu.pipeline_mode<synchronous>, transform_indices = @transform_8, window_bounds = array<i64: 128, 2>}, {pipeline_mode = #tpu.pipeline_mode<synchronous>, transform_indices = @transform_9, window_bounds = array<i64: 2, 128>}, {pipeline_mode = #tpu.pipeline_mode<synchronous>, transform_indices = @transform_10, window_bounds = array<i64: 16, 128>}]} {
    %c0 = arith.constant 0 : index
    %c0_0 = arith.constant 0 : index
    %0 = vector.load %arg7[%c0, %c0_0] : memref<16x8xf32, #tpu.memory_space<vmem>>, vector<16x1xf32>
    %c0_1 = arith.constant 0 : index
    %c1 = arith.constant 1 : index
    %1 = vector.load %arg7[%c0_1, %c1] : memref<16x8xf32, #tpu.memory_space<vmem>>, vector<16x1xf32>
    %c0_2 = arith.constant 0 : index
    %c2 = arith.constant 2 : index
    %2 = vector.load %arg7[%c0_2, %c2] : memref<16x8xf32, #tpu.memory_space<vmem>>, vector<16x1xf32>
    %c0_3 = arith.constant 0 : index
    %c3 = arith.constant 3 : index
    %3 = vector.load %arg7[%c0_3, %c3] : memref<16x8xf32, #tpu.memory_space<vmem>>, vector<16x1xf32>
    %c0_4 = arith.constant 0 : index
    %c4 = arith.constant 4 : index
    %4 = vector.load %arg7[%c0_4, %c4] : memref<16x8xf32, #tpu.memory_space<vmem>>, vector<16x1xf32>
    %c0_5 = arith.constant 0 : index
    %c5 = arith.constant 5 : index
    %5 = vector.load %arg7[%c0_5, %c5] : memref<16x8xf32, #tpu.memory_space<vmem>>, vector<16x1xf32>
    %c0_6 = arith.constant 0 : index
    %c6 = arith.constant 6 : index
    %6 = vector.load %arg7[%c0_6, %c6] : memref<16x8xf32, #tpu.memory_space<vmem>>, vector<16x1xf32>
    %c0_7 = arith.constant 0 : index
    %c7 = arith.constant 7 : index
    %7 = vector.load %arg7[%c0_7, %c7] : memref<16x8xf32, #tpu.memory_space<vmem>>, vector<2x1xf32>
    %c0_8 = arith.constant 0 : index
    %c0_9 = arith.constant 0 : index
    %8 = vector.load %arg8[%c0_8, %c0_9] : memref<4x128xf32, #tpu.memory_space<vmem>>, vector<1x128xf32>
    %c0_10 = arith.constant 0 : index
    %c0_11 = arith.constant 0 : index
    %9 = vector.load %arg1[%c0_10, %c0_11] : memref<4x128xf32, #tpu.memory_space<vmem>>, vector<4x128xf32>
    %c1_i32 = arith.constant 1 : i32
    %10 = tpu.dynamic_rotate %9 by %c1_i32 dim 1 : vector<4x128xf32>, i32 -> vector<4x128xf32>
    %c1_12 = arith.constant 1 : index
    %c0_13 = arith.constant 0 : index
    %11 = vector.load %arg8[%c1_12, %c0_13] : memref<4x128xf32, #tpu.memory_space<vmem>>, vector<1x128xf32>
    %12 = vector.broadcast %11 : vector<1x128xf32> to vector<4x128xf32>
    %13 = arith.mulf %10, %12 : vector<4x128xf32>
    %c0_14 = arith.constant 0 : index
    %c0_15 = arith.constant 0 : index
    %14 = vector.load %arg2[%c0_14, %c0_15] : memref<48x4xbf16, #tpu.memory_space<vmem>>, vector<16x4xbf16>
    %15 = arith.truncf %13 : vector<4x128xf32> to vector<4x128xbf16>
    %cst = arith.constant dense<0.000000e+00> : vector<16x128xf32>
    %16 = tpu.matmul %14, %15, %cst {dimension_numbers = #tpu.dot_dimension_numbers<[1], [0], [0], [1], [0, 0, 1, 1], [], []>} : vector<16x4xbf16>, vector<4x128xbf16>, vector<16x128xf32> -> vector<16x128xf32>
    %c16 = arith.constant 16 : index
    %c0_16 = arith.constant 0 : index
    %17 = vector.load %arg2[%c16, %c0_16] : memref<48x4xbf16, #tpu.memory_space<vmem>>, vector<16x4xbf16>
    %18 = arith.truncf %9 : vector<4x128xf32> to vector<4x128xbf16>
    %cst_17 = arith.constant dense<0.000000e+00> : vector<16x128xf32>
    %19 = tpu.matmul %17, %18, %cst_17 {dimension_numbers = #tpu.dot_dimension_numbers<[1], [0], [0], [1], [0, 0, 1, 1], [], []>} : vector<16x4xbf16>, vector<4x128xbf16>, vector<16x128xf32> -> vector<16x128xf32>
    %20 = arith.addf %16, %19 : vector<16x128xf32>
    %c127_i32 = arith.constant 127 : i32
    %21 = tpu.dynamic_rotate %9 by %c127_i32 dim 1 : vector<4x128xf32>, i32 -> vector<4x128xf32>
    %c3_18 = arith.constant 3 : index
    %c0_19 = arith.constant 0 : index
    %22 = vector.load %arg8[%c3_18, %c0_19] : memref<4x128xf32, #tpu.memory_space<vmem>>, vector<1x128xf32>
    %23 = vector.broadcast %22 : vector<1x128xf32> to vector<4x128xf32>
    %24 = arith.mulf %21, %23 : vector<4x128xf32>
    %c32 = arith.constant 32 : index
    %c0_20 = arith.constant 0 : index
    %25 = vector.load %arg2[%c32, %c0_20] : memref<48x4xbf16, #tpu.memory_space<vmem>>, vector<16x4xbf16>
    %26 = arith.truncf %24 : vector<4x128xf32> to vector<4x128xbf16>
    %cst_21 = arith.constant dense<0.000000e+00> : vector<16x128xf32>
    %27 = tpu.matmul %25, %26, %cst_21 {dimension_numbers = #tpu.dot_dimension_numbers<[1], [0], [0], [1], [0, 0, 1, 1], [], []>} : vector<16x4xbf16>, vector<4x128xbf16>, vector<16x128xf32> -> vector<16x128xf32>
    %28 = arith.addf %20, %27 : vector<16x128xf32>
    %cst_22 = arith.constant dense<0.000000e+00> : vector<16xf32>
    %29 = vector.multi_reduction <add>, %28, %cst_22 [1] : vector<16x128xf32> to vector<16xf32>
    %30 = vector.shape_cast %29 : vector<16xf32> to vector<16x1xf32>
    %31 = arith.mulf %28, %28 : vector<16x128xf32>
    %cst_23 = arith.constant dense<0.000000e+00> : vector<16xf32>
    %32 = vector.multi_reduction <add>, %31, %cst_23 [1] : vector<16x128xf32> to vector<16xf32>
    %33 = vector.shape_cast %32 : vector<16xf32> to vector<16x1xf32>
    %cst_24 = arith.constant 3.125000e-02 : f32
    %34 = vector.broadcast %cst_24 : f32 to vector<16x1xf32>
    %35 = arith.mulf %30, %34 : vector<16x1xf32>
    %cst_25 = arith.constant 3.125000e-02 : f32
    %36 = vector.broadcast %cst_25 : f32 to vector<16x1xf32>
    %37 = arith.mulf %33, %36 : vector<16x1xf32>
    %38 = arith.mulf %35, %35 : vector<16x1xf32>
    %39 = arith.subf %37, %38 : vector<16x1xf32>
    %cst_26 = arith.constant 0.000000e+00 : f32
    %40 = vector.broadcast %cst_26 : f32 to vector<16x1xf32>
    %41 = arith.maximumf %39, %40 : vector<16x1xf32>
    %cst_27 = arith.constant 9.99999974E-6 : f32
    %42 = vector.broadcast %cst_27 : f32 to vector<16x1xf32>
    %43 = arith.addf %41, %42 : vector<16x1xf32>
    %44 = math.rsqrt %43 : vector<16x1xf32>
    %45 = arith.mulf %0, %44 : vector<16x1xf32>
    %46 = vector.broadcast %45 : vector<16x1xf32> to vector<16x128xf32>
    %47 = arith.mulf %28, %46 : vector<16x128xf32>
    %48 = arith.mulf %35, %45 : vector<16x1xf32>
    %49 = arith.subf %1, %48 : vector<16x1xf32>
    %50 = vector.broadcast %49 : vector<16x1xf32> to vector<16x128xf32>
    %51 = arith.addf %47, %50 : vector<16x128xf32>
    %cst_28 = arith.constant 0.000000e+00 : f32
    %52 = vector.broadcast %cst_28 : f32 to vector<16x128xf32>
    %53 = arith.maximumf %51, %52 : vector<16x128xf32>
    %54 = vector.broadcast %8 : vector<1x128xf32> to vector<16x128xf32>
    %55 = arith.mulf %53, %54 : vector<16x128xf32>
    %c1_i32_29 = arith.constant 1 : i32
    %56 = tpu.dynamic_rotate %55 by %c1_i32_29 dim 1 : vector<16x128xf32>, i32 -> vector<16x128xf32>
    %c1_30 = arith.constant 1 : index
    %c0_31 = arith.constant 0 : index
    %57 = vector.load %arg8[%c1_30, %c0_31] : memref<4x128xf32, #tpu.memory_space<vmem>>, vector<1x128xf32>
    %58 = vector.broadcast %57 : vector<1x128xf32> to vector<16x128xf32>
    %59 = arith.mulf %56, %58 : vector<16x128xf32>
    %c0_32 = arith.constant 0 : index
    %c0_33 = arith.constant 0 : index
    %60 = vector.load %arg3[%c0_32, %c0_33] : memref<48x16xbf16, #tpu.memory_space<vmem>>, vector<16x16xbf16>
    %61 = arith.truncf %59 : vector<16x128xf32> to vector<16x128xbf16>
    %cst_34 = arith.constant dense<0.000000e+00> : vector<16x128xf32>
    %62 = tpu.matmul %60, %61, %cst_34 {dimension_numbers = #tpu.dot_dimension_numbers<[1], [0], [0], [1], [0, 0, 1, 1], [], []>} : vector<16x16xbf16>, vector<16x128xbf16>, vector<16x128xf32> -> vector<16x128xf32>
    %c16_35 = arith.constant 16 : index
    %c0_36 = arith.constant 0 : index
    %63 = vector.load %arg3[%c16_35, %c0_36] : memref<48x16xbf16, #tpu.memory_space<vmem>>, vector<16x16xbf16>
    %64 = arith.truncf %55 : vector<16x128xf32> to vector<16x128xbf16>
    %cst_37 = arith.constant dense<0.000000e+00> : vector<16x128xf32>
    %65 = tpu.matmul %63, %64, %cst_37 {dimension_numbers = #tpu.dot_dimension_numbers<[1], [0], [0], [1], [0, 0, 1, 1], [], []>} : vector<16x16xbf16>, vector<16x128xbf16>, vector<16x128xf32> -> vector<16x128xf32>
    %66 = arith.addf %62, %65 : vector<16x128xf32>
    %c127_i32_38 = arith.constant 127 : i32
    %67 = tpu.dynamic_rotate %55 by %c127_i32_38 dim 1 : vector<16x128xf32>, i32 -> vector<16x128xf32>
    %c3_39 = arith.constant 3 : index
    %c0_40 = arith.constant 0 : index
    %68 = vector.load %arg8[%c3_39, %c0_40] : memref<4x128xf32, #tpu.memory_space<vmem>>, vector<1x128xf32>
    %69 = vector.broadcast %68 : vector<1x128xf32> to vector<16x128xf32>
    %70 = arith.mulf %67, %69 : vector<16x128xf32>
    %c32_41 = arith.constant 32 : index
    %c0_42 = arith.constant 0 : index
    %71 = vector.load %arg3[%c32_41, %c0_42] : memref<48x16xbf16, #tpu.memory_space<vmem>>, vector<16x16xbf16>
    %72 = arith.truncf %70 : vector<16x128xf32> to vector<16x128xbf16>
    %cst_43 = arith.constant dense<0.000000e+00> : vector<16x128xf32>
    %73 = tpu.matmul %71, %72, %cst_43 {dimension_numbers = #tpu.dot_dimension_numbers<[1], [0], [0], [1], [0, 0, 1, 1], [], []>} : vector<16x16xbf16>, vector<16x128xbf16>, vector<16x128xf32> -> vector<16x128xf32>
    %74 = arith.addf %66, %73 : vector<16x128xf32>
    %cst_44 = arith.constant dense<0.000000e+00> : vector<16xf32>
    %75 = vector.multi_reduction <add>, %74, %cst_44 [1] : vector<16x128xf32> to vector<16xf32>
    %76 = vector.shape_cast %75 : vector<16xf32> to vector<16x1xf32>
    %77 = arith.mulf %74, %74 : vector<16x128xf32>
    %cst_45 = arith.constant dense<0.000000e+00> : vector<16xf32>
    %78 = vector.multi_reduction <add>, %77, %cst_45 [1] : vector<16x128xf32> to vector<16xf32>
    %79 = vector.shape_cast %78 : vector<16xf32> to vector<16x1xf32>
    %cst_46 = arith.constant 3.125000e-02 : f32
    %80 = vector.broadcast %cst_46 : f32 to vector<16x1xf32>
    %81 = arith.mulf %76, %80 : vector<16x1xf32>
    %cst_47 = arith.constant 3.125000e-02 : f32
    %82 = vector.broadcast %cst_47 : f32 to vector<16x1xf32>
    %83 = arith.mulf %79, %82 : vector<16x1xf32>
    %84 = arith.mulf %81, %81 : vector<16x1xf32>
    %85 = arith.subf %83, %84 : vector<16x1xf32>
    %cst_48 = arith.constant 0.000000e+00 : f32
    %86 = vector.broadcast %cst_48 : f32 to vector<16x1xf32>
    %87 = arith.maximumf %85, %86 : vector<16x1xf32>
    %cst_49 = arith.constant 9.99999974E-6 : f32
    %88 = vector.broadcast %cst_49 : f32 to vector<16x1xf32>
    %89 = arith.addf %87, %88 : vector<16x1xf32>
    %90 = math.rsqrt %89 : vector<16x1xf32>
    %91 = arith.mulf %2, %90 : vector<16x1xf32>
    %92 = vector.broadcast %91 : vector<16x1xf32> to vector<16x128xf32>
    %93 = arith.mulf %74, %92 : vector<16x128xf32>
    %94 = arith.mulf %81, %91 : vector<16x1xf32>
    %95 = arith.subf %3, %94 : vector<16x1xf32>
    %96 = vector.broadcast %95 : vector<16x1xf32> to vector<16x128xf32>
    %97 = arith.addf %93, %96 : vector<16x128xf32>
    %cst_50 = arith.constant 0.000000e+00 : f32
    %98 = vector.broadcast %cst_50 : f32 to vector<16x128xf32>
    %99 = arith.maximumf %97, %98 : vector<16x128xf32>
    %c0_51 = arith.constant 0 : index
    %c0_52 = arith.constant 0 : index
    %100 = vector.load %arg4[%c0_51, %c0_52] : memref<16x4xbf16, #tpu.memory_space<vmem>>, vector<16x4xbf16>
    %101 = arith.truncf %9 : vector<4x128xf32> to vector<4x128xbf16>
    %cst_53 = arith.constant dense<0.000000e+00> : vector<16x128xf32>
    %102 = tpu.matmul %100, %101, %cst_53 {dimension_numbers = #tpu.dot_dimension_numbers<[1], [0], [0], [1], [0, 0, 1, 1], [], []>} : vector<16x4xbf16>, vector<4x128xbf16>, vector<16x128xf32> -> vector<16x128xf32>
    %cst_54 = arith.constant dense<0.000000e+00> : vector<16xf32>
    %103 = vector.multi_reduction <add>, %102, %cst_54 [1] : vector<16x128xf32> to vector<16xf32>
    %104 = vector.shape_cast %103 : vector<16xf32> to vector<16x1xf32>
    %105 = arith.mulf %102, %102 : vector<16x128xf32>
    %cst_55 = arith.constant dense<0.000000e+00> : vector<16xf32>
    %106 = vector.multi_reduction <add>, %105, %cst_55 [1] : vector<16x128xf32> to vector<16xf32>
    %107 = vector.shape_cast %106 : vector<16xf32> to vector<16x1xf32>
    %cst_56 = arith.constant 3.125000e-02 : f32
    %108 = vector.broadcast %cst_56 : f32 to vector<16x1xf32>
    %109 = arith.mulf %104, %108 : vector<16x1xf32>
    %cst_57 = arith.constant 3.125000e-02 : f32
    %110 = vector.broadcast %cst_57 : f32 to vector<16x1xf32>
    %111 = arith.mulf %107, %110 : vector<16x1xf32>
    %112 = arith.mulf %109, %109 : vector<16x1xf32>
    %113 = arith.subf %111, %112 : vector<16x1xf32>
    %cst_58 = arith.constant 0.000000e+00 : f32
    %114 = vector.broadcast %cst_58 : f32 to vector<16x1xf32>
    %115 = arith.maximumf %113, %114 : vector<16x1xf32>
    %cst_59 = arith.constant 9.99999974E-6 : f32
    %116 = vector.broadcast %cst_59 : f32 to vector<16x1xf32>
    %117 = arith.addf %115, %116 : vector<16x1xf32>
    %118 = math.rsqrt %117 : vector<16x1xf32>
    %119 = arith.mulf %4, %118 : vector<16x1xf32>
    %120 = vector.broadcast %119 : vector<16x1xf32> to vector<16x128xf32>
    %121 = arith.mulf %102, %120 : vector<16x128xf32>
    %122 = arith.mulf %109, %119 : vector<16x1xf32>
    %123 = arith.subf %5, %122 : vector<16x1xf32>
    %124 = vector.broadcast %123 : vector<16x1xf32> to vector<16x128xf32>
    %125 = arith.addf %121, %124 : vector<16x128xf32>
    %126 = arith.truncf %99 : vector<16x128xf32> to vector<16x128xbf16>
    %c0_60 = arith.constant 0 : index
    %c0_61 = arith.constant 0 : index
    %127 = vector.load %arg9[%c0_60, %c0_61] : memref<128x2xbf16, #tpu.memory_space<vmem>>, vector<128x2xbf16>
    %cst_62 = arith.constant dense<0.000000e+00> : vector<16x2xf32>
    %128 = tpu.matmul %126, %127, %cst_62 {dimension_numbers = #tpu.dot_dimension_numbers<[1], [0], [0], [1], [0, 0, 1, 1], [], []>} : vector<16x128xbf16>, vector<128x2xbf16>, vector<16x2xf32> -> vector<16x2xf32>
    %c0_63 = arith.constant 0 : index
    %c0_64 = arith.constant 0 : index
    %129 = vector.load %arg5[%c0_63, %c0_64] : memref<2x16xf32, #tpu.memory_space<vmem>>, vector<2x16xf32>
    %cst_65 = arith.constant dense<0.000000e+00> : vector<2x2xf32>
    %130 = tpu.matmul %129, %128, %cst_65 {dimension_numbers = #tpu.dot_dimension_numbers<[1], [0], [0], [1], [0, 0, 1, 1], [], []>} : vector<2x16xf32>, vector<16x2xf32>, vector<2x2xf32> -> vector<2x2xf32>
    %131 = vector.broadcast %7 : vector<2x1xf32> to vector<2x2xf32>
    %132 = arith.addf %130, %131 : vector<2x2xf32>
    %cst_66 = arith.constant 0.000000e+00 : f32
    %133 = vector.broadcast %cst_66 : f32 to vector<2x2xf32>
    %134 = arith.maximumf %132, %133 : vector<2x2xf32>
    %c0_67 = arith.constant 0 : index
    %c0_68 = arith.constant 0 : index
    %135 = vector.load %arg6[%c0_67, %c0_68] : memref<16x2xf32, #tpu.memory_space<vmem>>, vector<16x2xf32>
    %cst_69 = arith.constant dense<0.000000e+00> : vector<16x2xf32>
    %136 = tpu.matmul %135, %134, %cst_69 {dimension_numbers = #tpu.dot_dimension_numbers<[1], [0], [0], [1], [0, 0, 1, 1], [], []>} : vector<16x2xf32>, vector<2x2xf32>, vector<16x2xf32> -> vector<16x2xf32>
    %137 = vector.broadcast %6 : vector<16x1xf32> to vector<16x2xf32>
    %138 = arith.addf %136, %137 : vector<16x2xf32>
    %cst_70 = arith.constant 0.000000e+00 : f32
    %139 = vector.broadcast %cst_70 : f32 to vector<16x2xf32>
    %140 = arith.subf %139, %138 : vector<16x2xf32>
    %141 = math.exp %140 : vector<16x2xf32>
    %cst_71 = arith.constant 1.000000e+00 : f32
    %142 = vector.broadcast %cst_71 : f32 to vector<16x2xf32>
    %143 = arith.addf %142, %141 : vector<16x2xf32>
    %cst_72 = arith.constant 1.000000e+00 : f32
    %144 = vector.broadcast %cst_72 : f32 to vector<16x2xf32>
    %145 = arith.divf %144, %143 : vector<16x2xf32>
    %146 = arith.truncf %145 : vector<16x2xf32> to vector<16x2xbf16>
    %c0_73 = arith.constant 0 : index
    %c0_74 = arith.constant 0 : index
    %147 = vector.load %arg10[%c0_73, %c0_74] : memref<2x128xbf16, #tpu.memory_space<vmem>>, vector<2x128xbf16>
    %cst_75 = arith.constant dense<0.000000e+00> : vector<16x128xf32>
    %148 = tpu.matmul %146, %147, %cst_75 {dimension_numbers = #tpu.dot_dimension_numbers<[1], [0], [0], [1], [0, 0, 1, 1], [], []>} : vector<16x2xbf16>, vector<2x128xbf16>, vector<16x128xf32> -> vector<16x128xf32>
    %149 = arith.mulf %99, %148 : vector<16x128xf32>
    %150 = arith.addf %149, %125 : vector<16x128xf32>
    %cst_76 = arith.constant 0.000000e+00 : f32
    %151 = vector.broadcast %cst_76 : f32 to vector<16x128xf32>
    %152 = arith.maximumf %150, %151 : vector<16x128xf32>
    %c127_i32_77 = arith.constant 127 : i32
    %153 = tpu.dynamic_rotate %152 by %c127_i32_77 dim 1 : vector<16x128xf32>, i32 -> vector<16x128xf32>
    %154 = arith.maximumf %152, %153 : vector<16x128xf32>
    %c0_78 = arith.constant 0 : index
    %c0_79 = arith.constant 0 : index
    %155 = vector.load %arg11[%c0_78, %c0_79] : memref<16x128xf32, #tpu.memory_space<vmem>>, vector<16x128xf32>
    tpu.vector_store %arg11[%c0_78, %c0_79], %154 {strides = array<i32>} : memref<16x128xf32, #tpu.memory_space<vmem>>, vector<16x128xf32>,
    return
  }
  func.func @transform_0(%arg0: i32) -> (i32, i32) {
    %c0_i32 = arith.constant 0 : i32
    %c0_i32_0 = arith.constant 0 : i32
    %c0_i32_1 = arith.constant 0 : i32
    return %c0_i32, %c0_i32_0 : i32, i32
  }
  func.func @transform_1(%arg0: i32) -> (i32, i32) {
    %c0_i32 = arith.constant 0 : i32
    %c0_i32_0 = arith.constant 0 : i32
    %c0_i32_1 = arith.constant 0 : i32
    return %c0_i32, %c0_i32_0 : i32, i32
  }
  func.func @transform_2(%arg0: i32) -> (i32, i32) {
    %c0_i32 = arith.constant 0 : i32
    %c0_i32_0 = arith.constant 0 : i32
    %c0_i32_1 = arith.constant 0 : i32
    return %c0_i32, %c0_i32_0 : i32, i32
  }
  func.func @transform_3(%arg0: i32) -> (i32, i32) {
    %c0_i32 = arith.constant 0 : i32
    %c0_i32_0 = arith.constant 0 : i32
    %c0_i32_1 = arith.constant 0 : i32
    return %c0_i32, %c0_i32_0 : i32, i32
  }
  func.func @transform_4(%arg0: i32) -> (i32, i32) {
    %c0_i32 = arith.constant 0 : i32
    %c0_i32_0 = arith.constant 0 : i32
    %c0_i32_1 = arith.constant 0 : i32
    return %c0_i32, %c0_i32_0 : i32, i32
  }
  func.func @transform_5(%arg0: i32) -> (i32, i32) {
    %c0_i32 = arith.constant 0 : i32
    %c0_i32_0 = arith.constant 0 : i32
    %c0_i32_1 = arith.constant 0 : i32
    return %c0_i32, %c0_i32_0 : i32, i32
  }
  func.func @transform_6(%arg0: i32) -> (i32, i32) {
    %c0_i32 = arith.constant 0 : i32
    %c0_i32_0 = arith.constant 0 : i32
    %c0_i32_1 = arith.constant 0 : i32
    return %c0_i32, %c0_i32_0 : i32, i32
  }
  func.func @transform_7(%arg0: i32) -> (i32, i32) {
    %c0_i32 = arith.constant 0 : i32
    %c0_i32_0 = arith.constant 0 : i32
    %c0_i32_1 = arith.constant 0 : i32
    return %c0_i32, %c0_i32_0 : i32, i32
  }
  func.func @transform_8(%arg0: i32) -> (i32, i32) {
    %c0_i32 = arith.constant 0 : i32
    %c0_i32_0 = arith.constant 0 : i32
    %c0_i32_1 = arith.constant 0 : i32
    return %c0_i32, %c0_i32_0 : i32, i32
  }
  func.func @transform_9(%arg0: i32) -> (i32, i32) {
    %c0_i32 = arith.constant 0 : i32
    %c0_i32_0 = arith.constant 0 : i32
    %c0_i32_1 = arith.constant 0 : i32
    return %c0_i32, %c0_i32_0 : i32, i32
  }
  func.func @transform_10(%arg0: i32) -> (i32, i32) {
    %c0_i32 = arith.constant 0 : i32
    %c0_i32_0 = arith.constant 0 : i32
    %c0_i32_1 = arith.constant 0 : i32
    return %c0_i32, %c0_i32_0 : i32, i32
  }
}

</mosaic_0001>

<bundles_post_ra>
// kernel: tpu_custom_call.1
= control target key start
LH: loop header
LB: loop body
LE: loop exit
PB: predicated region body
PF: predicated region fallthrough
CT: control target
= control target key end

     0   :  { %vm65_vm0 = vcmask 1041408   ;;  %s1244_s15 = smov 1   ;;  %v1245_v1 = vmov 0.0   ;;  %vm1246_vm1 = vmmov 0   ;;  %vm61_vm2 = vcmask 31744   ;;  %s1536_s0 = inlined_call_operand.vmem [shape: f32[4,128], index: 0, kind: input, shape index: {}]   ;;  %s1537_s1 = inlined_call_operand.vmem [shape: bf16[48,4], index: 1, kind: input, shape index: {}]   ;;  %s1538_s2 = inlined_call_operand.vmem [shape: bf16[48,16], index: 2, kind: input, shape index: {}]   ;;  %s1539_s3 = inlined_call_operand.vmem [shape: bf16[16,4], index: 3, kind: input, shape index: {}]   ;;  %s1540_s4 = inlined_call_operand.vmem [shape: f32[2,16], index: 4, kind: input, shape index: {}]   ;;  %s1541_s5 = inlined_call_operand.vmem [shape: f32[16,2], index: 5, kind: input, shape index: {}]   ;;  %s1542_s6 = inlined_call_operand.vmem [shape: f32[16,8], index: 6, kind: input, shape index: {}]   ;;  %s1543_s7 = inlined_call_operand.vmem [shape: f32[4,128], index: 7, kind: input, shape index: {}]   ;;  %s1544_s8 = inlined_call_operand.vmem [shape: bf16[128,2], index: 8, kind: input, shape index: {}]   ;;  %s1545_s9 = inlined_call_operand.vmem [shape: bf16[2,128], index: 9, kind: input, shape index: {}]   ;;  %s1546_s10 = inlined_call_operand.hbm [shape: f32[16,128], index: 10, kind: output, shape index: {}]  }
   0x1   :  { %v41_v0 = vld [vmem:[%s1536_s0] sm:$0xf]  ;;  %1081 = vmatprep.subr.bf16.mxu0 %v1245_v1  ;;  %1083 = vmatprep.mubr.msk.bf16.mxu0 %vm1246_vm1, %v1245_v1  ;;  %v1187_v3 = vld [vmem:[%s1537_s1 + $0x8] sm:$0xff]   ;;  %s1247_s0 = smov 127  }
   0x2   :  { %42 = vrot.lane.b32.xlu0 %v41_v0, %s1244_s15  ;;  %v55_v2 = vpack.c.bf16 %v41_v0, %v41_v0  ;;  %1087 = vmatprep.subr.bf16.mxu1 %v1245_v1 }
   0x3   :  { %1089 = vmatprep.mubr.msk.bf16.mxu1 %vm1246_vm1, %v1245_v1 }
   0x4   :  { %v1326_v4 = vsel %vm65_vm0, %v55_v2, 0 }
   0x5   :  { %1082 = vmatpush3.bf16.msra.mxu0 %v1326_v4 }
   0x6   :  { %162 = vrot.lane.b32.xlu0 %v41_v0, %s1247_s0  ;;  %1093 = vmatprep.subr.bf16.mxu0 %v1245_v1 }
   0x8   :  { %1084 = vmatmul.mubr.msk.bf16.vlgmr.msra.gmra.mxu0 %vm61_vm2, %v1187_v3 }
   0x9   :  { %1095 = vmatprep.mubr.msk.bf16.mxu0 %vm1246_vm1, %v1245_v1 }
   0xa   :  { %15 = vsyncpa [#allocation3], 0  ;;  %v1339_v5 = vld [vmem:[%s1543_s7 + $0x1] ss:$0 sm:$0xff]  ;;  %v1345_v8 = vld [vmem:[%s1543_s7 + $0x3] ss:$0 sm:$0xff] }
   0xb   :  { %v1188_v13 = vld [vmem:[%s1537_s1] sm:$0xff]   ;;  %v1189_v16 = vld [vmem:[%s1537_s1 + $0x10] sm:$0xff]   ;;  %v1248_v35 = vmov 0   ;;  %v1249_v52 = vmov 1   ;;  %v1373_v57 = vld [vmem:[%s1542_s6 + $0x8] sm:$0xff]  ;;  %vm314_vm3 = vcmask 130048  }
   0xc   :  { %1176 = vset.pattern.permute.xlu1 %v1248_v35  ;;  %1177 = vset.pattern.permute.xlu0 %v1249_v52  ;;  %v1367_v53 = vld [vmem:[%s1542_s6] sm:$0xff]  ;;  %vm843_vm4 = vcmask 15360   ;;  %vm945_vm5 = vcmask 1040384  }
  0x74   :  { %v43_v6 = vpop.permute.xlu0 %42 }
  0x75   :  { %v49_v7 = vmul.f32 %v1339_v5, %v43_v6 }
  0x77   :  { %v52_v9 = vpack.c.bf16 %v49_v7, %v49_v7 }
  0x78   :  { %v163_v10 = vpop.permute.xlu0 %162 }
  0x79   :  { %v169_v11 = vmul.f32 %v1345_v8, %v163_v10  ;;  %v119_v12 = vsel %vm65_vm0, %v52_v9, 0  ;;  %v1028_v10 = vld [vmem:[%s1543_s7] ss:$0 sm:$0xff] }
  0x7a   :  { %1088 = vmatpush3.bf16.msra.mxu1 %v119_v12 }
  0x7b   :  { %v172_v14 = vpack.c.bf16 %v169_v11, %v169_v11  ;;  %1099 = vmatprep.subr.bf16.mxu1 %v1245_v1 }
  0x7d   :  { %v182_v15 = vsel %vm65_vm0, %v172_v14, 0  ;;  %1090 = vmatmul.mubr.msk.bf16.vlgmr.msra.gmra.mxu1 %vm61_vm2, %v1188_v13 }
  0x7e   :  { %1094 = vmatpush3.bf16.msra.mxu0 %v182_v15  ;;  %1101 = vmatprep.mubr.msk.bf16.mxu1 %vm1246_vm1, %v1245_v1 }
  0x7f   :  { %1105 = vmatprep.subr.bf16.mxu0 %v1245_v1 }
  0x81   :  { %1096 = vmatmul.mubr.msk.bf16.vlgmr.msra.gmra.mxu0 %vm61_vm2, %v1189_v16 }
  0x82   :  { %1107 = vmatprep.mubr.msk.bf16.mxu0 %vm1246_vm1, %v1245_v1 }
  0xc8   :  { %v103_v17 = vpop.f32.mrf.mxu0 }
  0xca   :  { %v1085_v18 = vpop.f32.mrf.mxu0 }
  0xcc   :  { %v106_v19 = vpop.f32.mrf.mxu0 }
  0xce   :  { %v1086_v20 = vpop.f32.mrf.mxu0 }
 0x13d   :  { %v155_v21 = vpop.f32.mrf.mxu1 }
 0x13e   :  { %v156_v23 = vadd.f32 %v155_v21, %v103_v17 }
 0x13f   :  { %v1091_v22 = vpop.f32.mrf.mxu1 }
 0x141   :  { %v158_v24 = vpop.f32.mrf.mxu1  ;;  %v218_v25 = vpop.f32.mrf.mxu0 }
 0x142   :  { %v225_v26 = vadd.f32 %v218_v25, %v156_v23  ;;  %v159_v29 = vadd.f32 %v158_v24, %v106_v19  ;;  %v1190_v19 = vld [vmem:[%s1538_s2 + $0x8] sm:$0xff]  }
 0x143   :  { %v1092_v27 = vpop.f32.mrf.mxu1  ;;  %v1097_v28 = vpop.f32.mrf.mxu0 }
 0x144   :  { %227 = vadd.xlane.f32.xlu1 %v225_v26  ;;  %v231_v30 = vmul.f32 %v225_v26, %v225_v26  ;;  %v1191_v27 = vld [vmem:[%s1538_s2] sm:$0xff]  }
 0x145   :  { %v221_v31 = vpop.f32.mrf.mxu0 }
 0x146   :  { %v226_v32 = vadd.f32 %v221_v31, %v159_v29  ;;  %233 = vadd.xlane.f32.xlu0 %v231_v30 }
 0x147   :  { %v1098_v33 = vpop.f32.mrf.mxu0 }
 0x148   :  { %229 = vadd.xlane.f32.xlu1 %v226_v32  ;;  %v232_v34 = vmul.f32 %v226_v32, %v226_v32 }
 0x14c   :  { %235 = vadd.xlane.f32.xlu1 %v232_v34 }
 0x1cd   :  { %v228_v36 = vpop.xlane.xlu1 %227 }
 0x1ce   :  { %v237_v37 = vmul.f32 0.03125, %v228_v36 }
 0x1cf   :  { %v234_v38 = vpop.xlane.xlu0 %233 }
 0x1d0   :  { %v241_v39 = vmul.f32 %v237_v37, %v237_v37  ;;  %v239_v40 = vmul.f32 0.03125, %v234_v38 }
 0x1d1   :  { %v230_v41 = vpop.xlane.xlu1 %229 }
 0x1d2   :  { %v243_v42 = vsub.f32 %v239_v40, %v241_v39  ;;  %v238_v43 = vmul.f32 0.03125, %v230_v41 }
 0x1d4   :  { %v245_v44 = vmax.f32 %v243_v42, 0.0  ;;  %v242_v47 = vmul.f32 %v238_v43, %v238_v43 }
 0x1d5   :  { %v236_v45 = vpop.xlane.xlu1 %235 }
 0x1d6   :  { %v247_v46 = vadd.f32 1e-05, %v245_v44  ;;  %v240_v48 = vmul.f32 0.03125, %v236_v45 }
 0x1d8   :  { %1202 = vrsqrt.f32 %v247_v46  ;;  %v244_v49 = vsub.f32 %v240_v48, %v242_v47  ;;  %v1250_v47 = vmov 2   ;;  %v1193_v48 = vld [vmem:[%s1539_s3] sm:$0xff]  }
 0x1da   :  { %v246_v50 = vmax.f32 %v244_v49, 0.0 }
 0x1dc   :  { %v248_v51 = vadd.f32 1e-05, %v246_v50 }
 0x1de   :  { %1204 = vrsqrt.f32 %v248_v51 }
 0x1e5   :  { %v1203_v54 = vpop.eup %1202 }
 0x1e6   :  { %v251_v55 = vmul.f32 %v1203_v54, %v1367_v53 }
 0x1e8   :  { %v265_v56 = vmul.f32 %v251_v55, %v237_v37 }
 0x1ea   :  { %269 = vrot.lane.b32.xlu1 %v265_v56, %s1244_s15 }
 0x1eb   :  { %v1205_v58 = vpop.eup %1204 }
 0x1ec   :  { %v252_v59 = vmul.f32 %v1205_v58, %v1373_v57 }
 0x1ee   :  { %v266_v60 = vmul.f32 %v252_v59, %v238_v43 }
 0x1f0   :  { %271 = vrot.lane.b32.xlu1 %v266_v60, %s1244_s15 }
 0x1f4   :  { %255 = vperm.xlu1 %1176, %v251_v55  }
 0x1f8   :  { %260 = vperm.xlu1 %1176, %v252_v59  }
 0x1fc   :  { %1178 = vset.pattern.permute.xlu1 %v1249_v52 }
 0x25c   :  { %v270_v61 = vpop.permute.xlu1 %269 }
 0x25d   :  { %v275_v62 = vsub.f32 %v1367_v53, %v270_v61 }
 0x25f   :  { %279 = vperm.xlu0 %1177, %v275_v62  }
 0x262   :  { %v272_v63 = vpop.permute.xlu1 %271 }
 0x263   :  { %v276_v0 = vsub.f32 %v1373_v57, %v272_v63 }
 0x265   :  { %284 = vperm.xlu1 %1178, %v276_v0  }
 0x269   :  { %1179 = vset.pattern.permute.xlu1 %v1250_v47 }
 0x26f   :  { %v256_v2 = vpop.permute.xlu1 %255 }
 0x270   :  { %v263_v3 = vmul.f32 %v256_v2, %v225_v26 }
 0x273   :  { %v261_v9 = vpop.permute.xlu1 %260 }
 0x274   :  { %v264_v12 = vmul.f32 %v261_v9, %v226_v32 }
 0x2da   :  { %v280_v6 = vpop.permute.xlu0 %279 }
 0x2db   :  { %v287_v7 = vadd.f32 %v280_v6, %v263_v3 }
 0x2dd   :  { %v289_v11 = vmax.f32 %v287_v7, 0.0 }
 0x2df   :  { %v295_v13 = vmul.f32 %v1028_v10, %v289_v11 }
 0x2e0   :  { %v285_v14 = vpop.permute.xlu1 %284 }
 0x2e1   :  { %v288_v15 = vadd.f32 %v285_v14, %v264_v12  ;;  %297 = vrot.lane.b32.xlu1 %v295_v13, %s1244_s15  ;;  %v1251_v14 = vmov 7  }
 0x2e2   :  { %1181 = vset.pattern.permute.xlu0 %v1251_v14 }
 0x2e3   :  { %v290_v16 = vmax.f32 %v288_v15, 0.0  ;;  %v39_v15 = vld [vmem:[%s1542_s6] sm:$0x3] }
 0x2e5   :  { %v296_v17 = vmul.f32 %v1028_v10, %v290_v16  ;;  %408 = vrot.lane.b32.xlu1 %v295_v13, %s1247_s0  ;;  %v1195_v16 = vld [vmem:[%s1544_s8 + $0x30] sm:$0xff]  }
 0x2e7   :  { %v308_v18 = vpack.c.bf16 %v296_v17, %v295_v13  ;;  %v1194_v13 = vld [vmem:[%s1544_s8 + $0x38] sm:$0xff]  }
 0x2e9   :  { %299 = vrot.lane.b32.xlu1 %v296_v17, %s1244_s15  ;;  %1100 = vmatpush3.bf16.msra.mxu1 %v308_v18  ;;  %v1252_v18 = vmov 3  }
 0x2ea   :  { %1111 = vmatprep.subr.bf16.mxu1 %v1245_v1 }
 0x2ec   :  { %1102 = vmatmul.mubr.msk.bf16.vlgmr.msra.gmra.mxu1 %vm314_vm3, %v1190_v19  ;;  %v1197_v19 = vld [vmem:[%s1544_s8 + $0x20] sm:$0xff]  }
 0x2ed   :  { %410 = vrot.lane.b32.xlu1 %v296_v17, %s1247_s0  ;;  %1113 = vmatprep.mubr.msk.bf16.mxu1 %vm1246_vm1, %v1245_v1  ;;  %v1196_v17 = vld [vmem:[%s1544_s8 + $0x28] sm:$0xff]  }
 0x353   :  { %v298_v20 = vpop.permute.xlu1 %297 }
 0x354   :  { %v301_v23 = vmul.f32 %v1339_v5, %v298_v20  ;;  %v1198_v20 = vld [vmem:[%s1544_s8 + $0x18] sm:$0xff]  }
 0x357   :  { %v409_v21 = vpop.permute.xlu1 %408 }
 0x358   :  { %v412_v28 = vmul.f32 %v1345_v8, %v409_v21  ;;  %v1199_v21 = vld [vmem:[%s1544_s8 + $0x10] sm:$0xff]  }
 0x35b   :  { %v300_v22 = vpop.permute.xlu1 %299 }
 0x35c   :  { %v302_v24 = vmul.f32 %v1339_v5, %v300_v22  ;;  %v1192_v5 = vld [vmem:[%s1538_s2 + $0x10] sm:$0xff]  }
 0x35e   :  { %v305_v25 = vpack.c.bf16 %v302_v24, %v301_v23 }
 0x35f   :  { %v411_v26 = vpop.permute.xlu1 %410 }
 0x360   :  { %v413_v29 = vmul.f32 %v1345_v8, %v411_v26  ;;  %1106 = vmatpush3.bf16.msra.mxu0 %v305_v25 }
 0x361   :  { %1117 = vmatprep.subr.bf16.mxu0 %v1245_v1 }
 0x362   :  { %v416_v30 = vpack.c.bf16 %v413_v29, %v412_v28  ;;  %v1200_v29 = vld [vmem:[%s1544_s8 + $0x8] sm:$0xff]  }
 0x363   :  { %1108 = vmatmul.mubr.msk.bf16.vlgmr.msra.gmra.mxu0 %vm314_vm3, %v1191_v27 }
 0x364   :  { %1112 = vmatpush3.bf16.msra.mxu1 %v416_v30  ;;  %1118 = vmatpush3.bf16.msra.mxu0 %v1326_v4 }
 0x365   :  { %1119 = vmatprep.mubr.msk.bf16.mxu0 %vm1246_vm1, %v1245_v1  ;;  %1123 = vmatprep.subr.bf16.mxu1 %v1245_v1 }
 0x366   :  { %1143 = vmatprep.subr.mxu0 %v1245_v1 }
 0x367   :  { %1114 = vmatmul.mubr.msk.bf16.vlgmr.msra.gmra.mxu1 %vm314_vm3, %v1192_v5 }
 0x368   :  { %1139 = vmatprep.mubr.msk.bf16.mxu1 %vm1246_vm1, %v1245_v1  ;;  %1124 = vmatpush3.bf16.msra.mxu1 %v1194_v13 }
 0x369   :  { %1125 = vmatprep.subr.bf16.mxu1 %v1245_v1 }
 0x36b   :  { %1120 = vmatmul.mubr.msk.bf16.vlgmr.msra.gmra.mxu0 %vm61_vm2, %v1193_v48 }
 0x36c   :  { %1147 = vmatprep.mubr.msk.f32.mxu0 %vm1246_vm1, %v1245_v1  ;;  %1126 = vmatpush3.bf16.msra.mxu1 %v1195_v16 }
 0x36d   :  { %1127 = vmatprep.subr.bf16.mxu1 %v1245_v1 }
 0x370   :  { %1128 = vmatpush3.bf16.msra.mxu1 %v1196_v17 }
 0x371   :  { %1129 = vmatprep.subr.bf16.mxu1 %v1245_v1 }
 0x374   :  { %1130 = vmatpush3.bf16.msra.mxu1 %v1197_v19  ;;  %v751_v19 = vld [vmem:[%s1540_s4] sm:$0x3] }
 0x375   :  { %1131 = vmatprep.subr.bf16.mxu1 %v1245_v1 }
 0x378   :  { %1132 = vmatpush3.bf16.msra.mxu1 %v1198_v20 }
 0x379   :  { %1133 = vmatprep.subr.bf16.mxu1 %v1245_v1 }
 0x37c   :  { %1134 = vmatpush3.bf16.msra.mxu1 %v1199_v21 }
 0x37d   :  { %1135 = vmatprep.subr.bf16.mxu1 %v1245_v1 }
 0x380   :  { %1136 = vmatpush3.bf16.msra.mxu1 %v1200_v29 }
 0x381   :  { %1137 = vmatprep.subr.bf16.mxu1 %v1245_v1 }
 0x3ac   :  { %v352_v8 = vpop.f32.mrf.mxu1 }
 0x3ae   :  { %v1103_v31 = vpop.f32.mrf.mxu1 }
 0x3b0   :  { %v355_v32 = vpop.f32.mrf.mxu1 }
 0x3b2   :  { %v1104_v33 = vpop.f32.mrf.mxu1 }
 0x423   :  { %v401_v34 = vpop.f32.mrf.mxu0 }
 0x424   :  { %v402_v36 = vadd.f32 %v401_v34, %v352_v8  ;;  %v1201_v8 = vld [vmem:[%s1544_s8] sm:$0xff]  }
 0x425   :  { %v1109_v35 = vpop.f32.mrf.mxu0  ;;  %1138 = vmatpush3.bf16.msra.mxu1 %v1201_v8 }
 0x427   :  { %v404_v4 = vpop.f32.mrf.mxu0  ;;  %v459_v37 = vpop.f32.mrf.mxu1 }
 0x428   :  { %v1414_v38 = vadd.f32 %v459_v37, %v402_v36  ;;  %v405_v41 = vadd.f32 %v404_v4, %v355_v32  ;;  %v1253_v32 = vmov 6  }
 0x429   :  { %v1110_v39 = vpop.f32.mrf.mxu0  ;;  %v1115_v40 = vpop.f32.mrf.mxu1 }
 0x42a   :  { %468 = vadd.xlane.f32.xlu1 %v1414_v38  ;;  %v472_v44 = vmul.f32 %v1414_v38, %v1414_v38 }
 0x42b   :  { %v462_v42 = vpop.f32.mrf.mxu1  ;;  %v1461_v22 = vpop.f32.mrf.mxu0 }
 0x42c   :  { %v1417_v43 = vadd.f32 %v462_v42, %v405_v41  ;;  %v587_v23 = vmul.f32 %v1461_v22, %v1461_v22 }
 0x42d   :  { %v1116_v45 = vpop.f32.mrf.mxu1  ;;  %v1121_v24 = vpop.f32.mrf.mxu0 }
 0x42e   :  { %474 = vadd.xlane.f32.xlu1 %v472_v44  ;;  %470 = vadd.xlane.f32.xlu0 %v1417_v43  ;;  %v473_v46 = vmul.f32 %v1417_v43, %v1417_v43 }
 0x42f   :  { %v1466_v25 = vpop.f32.mrf.mxu0 }
 0x430   :  { %v588_v26 = vmul.f32 %v1466_v25, %v1466_v25 }
 0x431   :  { %v1122_v27 = vpop.f32.mrf.mxu0 }
 0x432   :  { %476 = vadd.xlane.f32.xlu1 %v473_v46  ;;  %v941_v27 = vld [vmem:[%s1545_s9] sm:$0x1] }
 0x4b3   :  { %v469_v49 = vpop.xlane.xlu1 %468 }
 0x4b4   :  { %v478_v50 = vmul.f32 0.03125, %v469_v49 }
 0x4b6   :  { %v482_v54 = vmul.f32 %v478_v50, %v478_v50 }
 0x4b7   :  { %v475_v51 = vpop.xlane.xlu1 %474  ;;  %v471_v52 = vpop.xlane.xlu0 %470 }
 0x4b8   :  { %v480_v55 = vmul.f32 0.03125, %v475_v51  ;;  %v479_v56 = vmul.f32 0.03125, %v471_v52 }
 0x4ba   :  { %v484_v58 = vsub.f32 %v480_v55, %v482_v54  ;;  %v483_v61 = vmul.f32 %v479_v56, %v479_v56 }
 0x4bb   :  { %v477_v59 = vpop.xlane.xlu1 %476 }
 0x4bc   :  { %v486_v60 = vmax.f32 %v484_v58, 0.0  ;;  %v481_v62 = vmul.f32 0.03125, %v477_v59 }
 0x4be   :  { %v488_v63 = vadd.f32 1e-05, %v486_v60  ;;  %v485_v0 = vsub.f32 %v481_v62, %v483_v61 }
 0x4c0   :  { %1206 = vrsqrt.f32 %v488_v63  ;;  %v487_v2 = vmax.f32 %v485_v0, 0.0 }
 0x4c2   :  { %v489_v3 = vadd.f32 1e-05, %v487_v2 }
 0x4c4   :  { %1208 = vrsqrt.f32 %v489_v3 }
 0x4cd   :  { %v1207_v6 = vpop.eup %1206 }
 0x4ce   :  { %v492_v7 = vmul.f32 %v1207_v6, %v1367_v53  ;;  %v1254_v6 = vmov 4  }
 0x4d0   :  { %v506_v9 = vmul.f32 %v492_v7, %v478_v50 }
 0x4d1   :  { %v1209_v10 = vpop.eup %1208 }
 0x4d2   :  { %510 = vrot.lane.b32.xlu1 %v506_v9, %s1244_s15  ;;  %v493_v11 = vmul.f32 %v1209_v10, %v1373_v57 }
 0x4d4   :  { %v507_v12 = vmul.f32 %v493_v11, %v479_v56 }
 0x4d6   :  { %496 = vperm.xlu1 %1179, %v492_v7   ;;  %512 = vrot.lane.b32.xlu0 %v507_v12, %s1244_s15  ;;  %v1255_v7 = vmov 5  }
 0x4da   :  { %501 = vperm.xlu1 %1179, %v493_v11   ;;  %754 = vperm.xlu0 %1181, %v39_v15  }
 0x4de   :  { %1180 = vset.pattern.permute.xlu1 %v1252_v18  ;;  %1184 = vset.pattern.permute.xlu0 %v1255_v7 }
 0x4f9   :  { %583 = vadd.xlane.f32.xlu0 %v1461_v22 }
 0x4fd   :  { %589 = vadd.xlane.f32.xlu0 %v587_v23 }
 0x501   :  { %591 = vadd.xlane.f32.xlu0 %v588_v26  ;;  %v832_v26 = vld [vmem:[%s1541_s5 + $0x8] sm:$0xff] }
 0x544   :  { %v511_v28 = vpop.permute.xlu1 %510 }
 0x545   :  { %v516_v30 = vsub.f32 %v1367_v53, %v511_v28  ;;  %v947_v28 = vsel %vm945_vm5, %v941_v27, 0 }
 0x547   :  { %520 = vperm.xlu1 %1180, %v516_v30  }
 0x548   :  { %v513_v5 = vpop.permute.xlu0 %512 }
 0x549   :  { %v517_v31 = vsub.f32 %v1373_v57, %v513_v5 }
 0x54b   :  { %525 = vperm.xlu1 %1180, %v517_v31  }
 0x54f   :  { %1182 = vset.pattern.permute.xlu1 %v1253_v32 }
 0x550   :  { %835 = vperm.xlu1 %1182, %v1367_v53  }
 0x551   :  { %v497_v42 = vpop.permute.xlu1 %496 }
 0x552   :  { %v504_v48 = vmul.f32 %v497_v42, %v1414_v38 }
 0x554   :  { %840 = vperm.xlu1 %1182, %v1373_v57  }
 0x555   :  { %v1482_v33 = vpop.permute.xlu0 %754  ;;  %v502_v44 = vpop.permute.xlu1 %501 }
 0x556   :  { %v505_v50 = vmul.f32 %v502_v44, %v1417_v43 }
 0x558   :  { %1183 = vset.pattern.permute.xlu1 %v1254_v6 }
 0x578   :  { %585 = vadd.xlane.f32.xlu1 %v1466_v25 }
 0x582   :  { %v584_v34 = vpop.xlane.xlu0 %583 }
 0x583   :  { %v593_v35 = vmul.f32 0.03125, %v584_v34 }
 0x585   :  { %v597_v36 = vmul.f32 %v593_v35, %v593_v35 }
 0x586   :  { %v590_v4 = vpop.xlane.xlu0 %589 }
 0x587   :  { %v595_v37 = vmul.f32 0.03125, %v590_v4 }
 0x589   :  { %v599_v39 = vsub.f32 %v595_v37, %v597_v36 }
 0x58a   :  { %v592_v43 = vpop.xlane.xlu0 %591 }
 0x58b   :  { %v601_v40 = vmax.f32 %v599_v39, 0.0  ;;  %v596_v62 = vmul.f32 0.03125, %v592_v43 }
 0x58d   :  { %v603_v41 = vadd.f32 1e-05, %v601_v40 }
 0x58f   :  { %1210 = vrsqrt.f32 %v603_v41 }
 0x59c   :  { %v1211_v45 = vpop.eup %1210 }
 0x59d   :  { %v607_v46 = vmul.f32 %v1211_v45, %v1367_v53 }
 0x59f   :  { %v621_v49 = vmul.f32 %v607_v46, %v593_v35 }
 0x5a1   :  { %625 = vrot.lane.b32.xlu1 %v621_v49, %s1244_s15 }
 0x5a5   :  { %611 = vperm.xlu1 %1183, %v607_v46  }
 0x5c2   :  { %v521_v47 = vpop.permute.xlu1 %520 }
 0x5c3   :  { %v1487_v51 = vadd.f32 %v521_v47, %v504_v48 }
 0x5c5   :  { %v530_v55 = vmax.f32 %v1487_v51, 0.0 }
 0x5c6   :  { %v526_v52 = vpop.permute.xlu1 %525 }
 0x5c7   :  { %v1490_v54 = vadd.f32 %v526_v52, %v505_v50 }
 0x5c9   :  { %v531_v56 = vmax.f32 %v1490_v54, 0.0 }
 0x5cb   :  { %v645_v58 = vpack.c.bf16 %v531_v56, %v530_v55  ;;  %v836_v38 = vpop.permute.xlu1 %835 }
 0x5cd   :  { %1140 = vmatmul.mubr.bf16.vlgmr.msra.gmra.mxu1 %v645_v58 }
 0x5cf   :  { %v841_v59 = vpop.permute.xlu1 %840 }
 0x601   :  { %v586_v60 = vpop.xlane.xlu1 %585 }
 0x602   :  { %v594_v61 = vmul.f32 0.03125, %v586_v60 }
 0x604   :  { %v598_v63 = vmul.f32 %v594_v61, %v594_v61 }
 0x606   :  { %v600_v0 = vsub.f32 %v596_v62, %v598_v63 }
 0x608   :  { %v602_v2 = vmax.f32 %v600_v0, 0.0 }
 0x60a   :  { %v604_v3 = vadd.f32 1e-05, %v602_v2 }
 0x60c   :  { %1212 = vrsqrt.f32 %v604_v3 }
 0x613   :  { %v626_v12 = vpop.permute.xlu1 %625 }
 0x614   :  { %v631_v13 = vsub.f32 %v1367_v53, %v626_v12  ;;  %v831_v53 = vld [vmem:[%s1541_s5] sm:$0xff]  ;;  %s1256_s5 = smov [#allocation2]  }
 0x615   :  { %s1009_s9 = sshll.u32 %s1256_s5, 4  ;;  %s1010_s9 = int_to_ptr.vmem [resolvable:$true] %s1009_s9 }
 0x616   :  { %s1222_s17 = scalar_lea.vmem %s1010_s9, 256  ;;  %p1227_p1 = scmp.lt.s32.totalorder %s1010_s9, %s1010_s9 }
 0x617   :  { %p1223_p0 = scmp.ne.s32.totalorder %s1010_s9, %s1222_s17  ;;  %p1228_p2 = scmp.lt.s32.totalorder %s1222_s17, %s1222_s17 }
 0x619   :  { %v1213_v9 = vpop.eup %1212  ;;  %p1229_p3 = por %p1228_p2, %p1227_p1 }
 0x61a   :  { %v608_v10 = vmul.f32 %v1213_v9, %v1373_v57 }
 0x61b   :  { %p1230_p4 = pnand %p1229_p3, %p1223_p0 }
 0x61c   :  { %v622_v11 = vmul.f32 %v608_v10, %v594_v61  ;;  %616 = vperm.xlu1 %1183, %v608_v10  }
 0x61e   :  { %627 = vrot.lane.b32.xlu0 %v622_v11, %s1244_s15 }
 0x620   :  { %1185 = vset.pattern.permute.xlu1 %v1255_v7  ;;  %v612_v41 = vpop.permute.xlu1 %611 }
 0x621   :  { %v619_v44 = vmul.f32 %v612_v41, %v1461_v22 }
 0x622   :  { %635 = vperm.xlu0 %1184, %v631_v13  }
 0x626   :  { %1186 = vset.pattern.permute.xlu0 %v1253_v32 }
 0x68d   :  { %v744_v14 = vpop.f32.mrf.mxu1 }
 0x68f   :  { %v1141_v15 = vpop.f32.mrf.mxu1 }
 0x690   :  { %v628_v16 = vpop.permute.xlu0 %627 }
 0x691   :  { %v747_v17 = vpop.f32.mrf.mxu1  ;;  %v632_v18 = vsub.f32 %v1373_v57, %v628_v16 }
 0x692   :  { %1144 = vmatpush3.msra.mxu0 %v747_v17 }
 0x693   :  { %v1142_v20 = vpop.f32.mrf.mxu1  ;;  %1145 = vmatprep.subr.mxu0 %v1245_v1  ;;  %640 = vperm.xlu1 %1185, %v632_v18  }
 0x694   :  { %1146 = vmatpush3.msra.mxu0 %v744_v14 }
 0x695   :  { %1148 = vmatmul.mubr.msk.f32.vlgmr.msra.gmra.mxu0 %vm314_vm3, %v751_v19 }
 0x696   :  { %1152 = vmatprep.mubr.msk.f32.mxu0 %vm843_vm4, %v831_v53 }
 0x697   :  { %v617_v42 = vpop.permute.xlu1 %616 }
 0x698   :  { %v620_v47 = vmul.f32 %v617_v42, %v1466_v25 }
 0x69d   :  { %v636_v45 = vpop.permute.xlu0 %635 }
 0x69e   :  { %v643_v48 = vadd.f32 %v636_v45, %v619_v44 }
 0x70e   :  { %v641_v50 = vpop.permute.xlu1 %640 }
 0x755   :  { %v826_v57 = vpop.f32.mrf.mxu0 }
 0x756   :  { %v827_v21 = vadd.f32 %v826_v57, %v1482_v33 }
 0x757   :  { %v1149_v23 = vpop.f32.mrf.mxu0 }
 0x758   :  { %v830_v24 = vmax.f32 %v827_v21, 0.0 }
 0x75a   :  { %1150 = vmatprep.subr.msk.mxu0 %vm65_vm0, %v830_v24 }
 0x75b   :  { %1151 = vmatpush3.msk.msra.mxu0 %vm65_vm0, %v830_v24 }
 0x75c   :  { %1153 = vmatmul.mubr.msk.f32.vlgmr.msra.gmra.mxu0 %vm843_vm4, %v832_v26  ;;  %1155 = vmatprep.subr.bf16.mxu0 %v1245_v1 }
 0x75d   :  { %1157 = vmatprep.mubr.msk.bf16.mxu0 %vm1246_vm1, %v1245_v1  ;;  %1156 = vmatpush3.bf16.msra.mxu0 %v947_v28 }
 0x81c   :  { %v1154_v29 = vpop.f32.mrf.mxu0 }
 0x81d   :  { %v925_v30 = vadd.f32 %v1154_v29, %v841_v59  ;;  %v644_v59 = vadd.f32 %v641_v50, %v620_v47 }
 0x81e   :  { %v919_v5 = vpop.f32.mrf.mxu0 }
 0x81f   :  { %v929_v8 = vsub.f32 0.0, %v925_v30  ;;  %v920_v31 = vadd.f32 %v919_v5, %v836_v38 }
 0x821   :  { %v932_v32 = vmul.f32 1.442695, %v929_v8  ;;  %v928_v33 = vsub.f32 0.0, %v920_v31 }
 0x823   :  { %1214 = vpow2.f32 %v932_v32  ;;  %v930_v34 = vmul.f32 1.442695, %v928_v33 }
 0x825   :  { %1216 = vpow2.f32 %v930_v34 }
 0x830   :  { %v1215_v35 = vpop.eup %1214 }
 0x831   :  { %v935_v36 = vadd.f32 1.0, %v1215_v35 }
 0x832   :  { %v1217_v1 = vpop.eup %1216 }
 0x833   :  { %v934_v4 = vadd.f32 1.0, %v1217_v1  ;;  %1218 = vrcp.f32 %v935_v36 }
 0x835   :  { %1220 = vrcp.f32 %v934_v4 }
 0x840   :  { %v1219_v37 = vpop.eup %1218 }
 0x842   :  { %v1221_v39 = vpop.eup %1220 }
 0x843   :  { %v940_v40 = vpack.c.bf16 %v1219_v37, %v1221_v39 }
 0x845   :  { %1158 = vmatmul.mubr.msk.bf16.vlgmr.msra.gmra.mxu0 %vm843_vm4, %v940_v40 }
 0x905   :  { %v983_v46 = vpop.f32.mrf.mxu0 }
 0x906   :  { %v990_v49 = vmul.f32 %v983_v46, %v530_v55 }
 0x907   :  { %v1159_v52 = vpop.f32.mrf.mxu0 }
 0x908   :  { %v992_v58 = vadd.f32 %v990_v49, %v643_v48 }
 0x909   :  { %v986_v38 = vpop.f32.mrf.mxu0 }
 0x90a   :  { %v994_v43 = vmax.f32 %v992_v58, 0.0  ;;  %v991_v60 = vmul.f32 %v986_v38, %v531_v56 }
 0x90b   :  { %v1160_v61 = vpop.f32.mrf.mxu0 }
 0x90c   :  { %v993_v62 = vadd.f32 %v991_v60, %v644_v59  ;;  %996 = vrot.lane.b32.xlu1 %v994_v43, %s1247_s0 }
 0x90e   :  { %v995_v22 = vmax.f32 %v993_v62, 0.0 }
 0x910   :  { %998 = vrot.lane.b32.xlu0 %v995_v22, %s1247_s0 }
 0x97e   :  { %v997_v25 = vpop.permute.xlu1 %996 }
 0x97f   :  { %v1000_v63 = vmax.f32 %v994_v43, %v997_v25 }
 0x981   :  { %1002 = vst [vmem:[#allocation2] sm:$0xff] %v1000_v63 }
 0x982   :  { %v999_v51 = vpop.permute.xlu0 %998 }
 0x983   :  { %v1001_v55 = vmax.f32 %v995_v22, %v999_v51 }
 0x985   :  { %1003 = vst [vmem:[#allocation2 + $0x8] sm:$0xff] %v1001_v55 }
 0x986   :  { %1233 = shalt.err (!%p1230_p4)
}
 0x987   :  { %s1257_s3 = smov 128   ;;  %s1258_s18 = smov 8  }
 0x988   :  { %1015 = dma.vmem_to_hbm [thread:$0]  %s1010_s9, 256, %s1546_s10, [#allocation3], %s1257_s3, %s1257_s3, %s1258_s18  }
 0x989   :  { %1242 = dma.done.wait [#allocation3], 256  }
 0x98a   :  { %1243 = vsyncadd [#allocation3], 4294967040 }
 0x98b   :  { %1019 = vsyncpa [#allocation3], 1 }

</bundles_post_ra>
